<compile_context>
chip_gen: v5e
topology: v5e:2x2
jax: 0.10.0
libtpu: 0.0.40
codegen_flags: <defaults>
</compile_context>

<pallas_src>
import math

import jax
import jax.numpy as jnp
from jax import lax
from jax.experimental import pallas as pl
from jax.experimental.pallas import tpu as pltpu

# ----------------------------- configuration -------------------------------
B = 2          # batch
S = 8          # seq_len
E = 32         # d_model (embed_dim)
H = 4          # encoder_attention_heads
HD = E // H    # head_dim
FF = 64        # encoder_ffn_dim
LN_EPS = 1e-5
SCALING = HD ** (-0.5)
NEG_INF = -1e9          # off-block / masked additive value (same scale as test mask)

BHS = B * H * S         # flattened (head, batch, seq) row count = 64

# rows of the packed small-parameter block (stored below the weights in slab_a)
_NVEC = 8
(_R_BQKV, _R_BO, _R_LN1W, _R_LN1B,
 _R_B1, _R_B2, _R_LN2W, _R_LN2B) = range(_NVEC)

_SLAB_A_ROWS = E + _NVEC      # 40
_SLAB_A_LANES = 192           # [wqkv : 0..96) | pad | [w1 : 128..192)
_W1_OFF = 128                 # w1 starts at a 128-lane tile boundary


def _gelu_exact(x):
    # exact (erf-based) GELU, matching torch.nn.functional.gelu default
    return 0.5 * x * (1.0 + lax.erf(x * (1.0 / math.sqrt(2.0))))


def _layer_norm(x, w, b):
    # x: (N, E), w/b: (1, E); biased variance like nn.LayerNorm
    mean = jnp.mean(x, axis=-1, keepdims=True)
    var = jnp.mean((x - mean) ** 2, axis=-1, keepdims=True)
    return (x - mean) * lax.rsqrt(var + LN_EPS) * w + b


# ------------------------------ Pallas kernel -------------------------------
def _encoder_layer_kernel(x_ref, mask_ref, a_ref, b_ref, out_ref):
    x = x_ref[...]                                     # (B*S, E)

    # ---- unpack weight / parameter slabs (static ref slices) ----
    wqkv = a_ref[0:E, 0:3 * E]                         # (E, 3E), q pre-scaled, v head-masked
    w1 = a_ref[0:E, _W1_OFF:_W1_OFF + FF]              # (E, FF)

    def vec(row, n):                                   # (1, n) packed bias/LN row
        return a_ref[E + row:E + row + 1, 0:n]

    b_qkv = vec(_R_BQKV, 3 * E)
    b_o = vec(_R_BO, E)
    ln1_w, ln1_b = vec(_R_LN1W, E), vec(_R_LN1B, E)
    b_1 = vec(_R_B1, FF)
    b_2 = vec(_R_B2, E)
    ln2_w, ln2_b = vec(_R_LN2W, E), vec(_R_LN2B, E)

    wo = b_ref[0:E, :]                                 # (E, E)
    w2 = b_ref[E:E + FF, :]                            # (FF, E)

    # ---- fused Q/K/V projection (one MXU matmul) ----
    qkv = jnp.dot(x, wqkv, preferred_element_type=jnp.float32) + b_qkv   # (B*S, 3E)

    # head-major flatten: rows ordered (head, batch, seq), lanes = head_dim
    def heads(col0):
        return jnp.concatenate(
            [qkv[:, col0 + h * HD: col0 + (h + 1) * HD] for h in range(H)], axis=0)

    qf = heads(0)          # (BHS, HD) = (64, 8)
    kf = heads(E)
    vf = heads(2 * E)      # layer_head_mask already folded into these columns

    # ---- one full-width score matmul; block-diagonal mask keeps only the
    #      same-(head, batch) interactions and carries the additive attn mask ----
    s = lax.dot_general(qf, kf, (((1,), (1,)), ((), ())),
                        preferred_element_type=jnp.float32)              # (64, 64)
    s = s + mask_ref[...]
    s = s - jnp.max(s, axis=-1, keepdims=True)
    p = jnp.exp(s)                                     # off-block terms underflow to 0
    p = p / jnp.sum(p, axis=-1, keepdims=True)         # exact softmax (EUP/VPU slack)

    ctx = jnp.dot(p, vf, preferred_element_type=jnp.float32)             # (64, 8)

    # merge heads back into lanes: (64, 8) -> (B*S, E), lanes ordered (head, dim)
    ctx = jnp.concatenate(
        [ctx[h * B * S:(h + 1) * B * S, :] for h in range(H)], axis=1)   # (16, 32)

    # single out-projection against the untouched (E, E) weight
    attn = jnp.dot(ctx, wo, preferred_element_type=jnp.float32) + b_o    # (B*S, E)

    # ---- residual + layer norm ----
    h1 = _layer_norm(x + attn, ln1_w, ln1_b)

    # ---- feed-forward ----
    f = _gelu_exact(jnp.dot(h1, w1, preferred_element_type=jnp.float32) + b_1)
    f = jnp.dot(f, w2, preferred_element_type=jnp.float32) + b_2

    # ---- residual + final layer norm ----
    out_ref[...] = _layer_norm(h1 + f, ln2_w, ln2_b)


# ------------------------- wrapper / packing ---------------------------------
def pack_operands(x, attn_mask, head_mask, p):
    """Pure layout plumbing: fold constants and pack params into few operands."""
    x_flat = x.reshape(B * S, E)

    # block-diagonal additive mask over the flattened (head, batch, seq) row axis
    mask_bd = jnp.full((BHS, BHS), NEG_INF, jnp.float32)
    for h in range(H):
        for b in range(B):
            g = h * B + b
            mask_bd = mask_bd.at[g * S:(g + 1) * S, g * S:(g + 1) * S].set(attn_mask[b, 0])

    # exact folds: 1/sqrt(HD) into Q columns, layer_head_mask into V columns
    hm_chan = jnp.repeat(head_mask, HD)                                   # (E,)
    wqkv = jnp.concatenate(
        [p["wq"] * SCALING, p["wk"], p["wv"] * hm_chan[None, :]], axis=1)  # (E, 3E)
    b_qkv = jnp.concatenate(
        [p["bq"][0] * SCALING, p["bk"][0], p["bv"][0] * hm_chan])          # (3E,)

    # slab A: rows 0:E -> [wqkv | pad | w1], rows E:E+8 -> packed bias/LN vectors
    slab_a = jnp.zeros((_SLAB_A_ROWS, _SLAB_A_LANES), jnp.float32)
    slab_a = slab_a.at[0:E, 0:3 * E].set(wqkv)
    slab_a = slab_a.at[0:E, _W1_OFF:_W1_OFF + FF].set(p["w1"])
    slab_a = slab_a.at[E + _R_BQKV, 0:3 * E].set(b_qkv)
    slab_a = slab_a.at[E + _R_BO, 0:E].set(p["bo"][0])
    slab_a = slab_a.at[E + _R_LN1W, 0:E].set(p["ln1_w"][0])
    slab_a = slab_a.at[E + _R_LN1B, 0:E].set(p["ln1_b"][0])
    slab_a = slab_a.at[E + _R_B1, 0:FF].set(p["b1"][0])
    slab_a = slab_a.at[E + _R_B2, 0:E].set(p["b2"][0])
    slab_a = slab_a.at[E + _R_LN2W, 0:E].set(p["ln2_w"][0])
    slab_a = slab_a.at[E + _R_LN2B, 0:E].set(p["ln2_b"][0])

    # slab B: wo (E,E) stacked over w2 (FF,E) along sublanes -> (96, 32)
    slab_b = jnp.concatenate([p["wo"], p["w2"]], axis=0)

    return x_flat, mask_bd, slab_a, slab_b


def bart_encoder_layer(x, attn_mask, head_mask, params):
    """x: (B, S, E) f32, attn_mask: (B, 1, S, S) f32 additive, head_mask: (H,) f32."""
    operands = pack_operands(x, attn_mask, head_mask, params)
    vmem = pl.BlockSpec(memory_space=pltpu.MemorySpace.VMEM)
    out_flat = pl.pallas_call(
        _encoder_layer_kernel,
        out_shape=jax.ShapeDtypeStruct((B * S, E), jnp.float32),
        in_specs=[vmem] * len(operands),
        out_specs=vmem,
    )(*operands)
    return out_flat.reshape(B, S, E)


# ------------------------- pure-JAX reference -------------------------------
def ref_forward(x, attn_mask, head_mask, p):
    q = (x @ p["wq"] + p["bq"]) * SCALING
    k = x @ p["wk"] + p["bk"]
    v = x @ p["wv"] + p["bv"]

    def split(t):  # (B,S,E) -> (B,H,S,HD)
        return t.reshape(B, S, H, HD).transpose(0, 2, 1, 3)

    qh, kh, vh = split(q), split(k), split(v)
    scores = jnp.einsum("bhqd,bhkd->bhqk", qh, kh) + attn_mask     # (B,H,S,S)
    probs = jax.nn.softmax(scores, axis=-1)
    probs = probs * head_mask[None, :, None, None]
    attn = jnp.einsum("bhqk,bhkd->bhqd", probs, vh)
    attn = attn.transpose(0, 2, 1, 3).reshape(B, S, E)
    attn = attn @ p["wo"] + p["bo"]

    def ln(t, w, b):
        m = jnp.mean(t, -1, keepdims=True)
        var = jnp.mean((t - m) ** 2, -1, keepdims=True)
        return (t - m) / jnp.sqrt(var + LN_EPS) * w + b

    h1 = ln(x + attn, p["ln1_w"], p["ln1_b"])
    f = jax.nn.gelu(h1 @ p["w1"] + p["b1"], approximate=False)
    f = f @ p["w2"] + p["b2"]
    return ln(h1 + f, p["ln2_w"], p["ln2_b"])


# --------------------------------- main --------------------------------------
if __name__ == "__main__":
    key = jax.random.PRNGKey(0)
    keys = jax.random.split(key, 16)

    def nrm(k, shape, scale=0.05):
        return (scale * jax.random.normal(k, shape)).astype(jnp.float32)

    params = {
        "wq": nrm(keys[0], (E, E)),  "bq": nrm(keys[1], (1, E)),
        "wk": nrm(keys[2], (E, E)),  "bk": nrm(keys[3], (1, E)),
        "wv": nrm(keys[4], (E, E)),  "bv": nrm(keys[5], (1, E)),
        "wo": nrm(keys[6], (E, E)),  "bo": nrm(keys[7], (1, E)),
        "ln1_w": jnp.ones((1, E), jnp.float32),
        "ln1_b": jnp.zeros((1, E), jnp.float32),
        "w1": nrm(keys[8], (E, FF)), "b1": nrm(keys[9], (1, FF)),
        "w2": nrm(keys[10], (FF, E)), "b2": nrm(keys[11], (1, E)),
        "ln2_w": jnp.ones((1, E), jnp.float32),
        "ln2_b": jnp.zeros((1, E), jnp.float32),
    }

    x = jax.random.normal(keys[12], (B, S, E), dtype=jnp.float32)
    # additive mask: last 2 key positions of batch 1 masked out
    attn_mask = jnp.zeros((B, 1, S, S), jnp.float32)
    attn_mask = attn_mask.at[1, :, :, -2:].set(-1e9)
    head_mask = jnp.ones((H,), jnp.float32).at[2].set(0.5)

    out = bart_encoder_layer(x, attn_mask, head_mask, params)
    out = jax.block_until_ready(out)

    ref = ref_forward(x, attn_mask, head_mask, params)
    assert out.shape == (B, S, E)
    err = jnp.max(jnp.abs(out - ref))
    assert jnp.allclose(out, ref, atol=1e-4, rtol=1e-4), f"max abs err {err}"

    print("KERNEL_OK")
</pallas_src>

<mosaic_0001>
module attributes {stable_mosaic.version = 11 : i64} {
  func.func @_encoder_layer_kernel(%arg0: memref<16x32xf32, #tpu.memory_space<vmem>>, %arg1: memref<64x64xf32, #tpu.memory_space<vmem>>, %arg2: memref<40x192xf32, #tpu.memory_space<vmem>>, %arg3: memref<96x32xf32, #tpu.memory_space<vmem>>, %arg4: memref<16x32xf32, #tpu.memory_space<vmem>>) attributes {dimension_semantics = [], scalar_prefetch = 0 : i64, scratch_operands = 0 : i64, tpu.core_type = #tpu.core_type<tc>} {
    %c0 = arith.constant 0 : index
    %c0_0 = arith.constant 0 : index
    %0 = vector.load %arg0[%c0, %c0_0] : memref<16x32xf32, #tpu.memory_space<vmem>>, vector<16x32xf32>
    %c0_1 = arith.constant 0 : index
    %c0_2 = arith.constant 0 : index
    %1 = vector.load %arg2[%c0_1, %c0_2] : memref<40x192xf32, #tpu.memory_space<vmem>>, vector<32x96xf32>
    %c0_3 = arith.constant 0 : index
    %c128 = arith.constant 128 : index
    %2 = vector.load %arg2[%c0_3, %c128] : memref<40x192xf32, #tpu.memory_space<vmem>>, vector<32x64xf32>
    %c32 = arith.constant 32 : index
    %c0_4 = arith.constant 0 : index
    %3 = vector.load %arg2[%c32, %c0_4] : memref<40x192xf32, #tpu.memory_space<vmem>>, vector<1x96xf32>
    %c33 = arith.constant 33 : index
    %c0_5 = arith.constant 0 : index
    %4 = vector.load %arg2[%c33, %c0_5] : memref<40x192xf32, #tpu.memory_space<vmem>>, vector<1x32xf32>
    %c34 = arith.constant 34 : index
    %c0_6 = arith.constant 0 : index
    %5 = vector.load %arg2[%c34, %c0_6] : memref<40x192xf32, #tpu.memory_space<vmem>>, vector<1x32xf32>
    %c35 = arith.constant 35 : index
    %c0_7 = arith.constant 0 : index
    %6 = vector.load %arg2[%c35, %c0_7] : memref<40x192xf32, #tpu.memory_space<vmem>>, vector<1x32xf32>
    %c36 = arith.constant 36 : index
    %c0_8 = arith.constant 0 : index
    %7 = vector.load %arg2[%c36, %c0_8] : memref<40x192xf32, #tpu.memory_space<vmem>>, vector<1x64xf32>
    %c37 = arith.constant 37 : index
    %c0_9 = arith.constant 0 : index
    %8 = vector.load %arg2[%c37, %c0_9] : memref<40x192xf32, #tpu.memory_space<vmem>>, vector<1x32xf32>
    %c38 = arith.constant 38 : index
    %c0_10 = arith.constant 0 : index
    %9 = vector.load %arg2[%c38, %c0_10] : memref<40x192xf32, #tpu.memory_space<vmem>>, vector<1x32xf32>
    %c39 = arith.constant 39 : index
    %c0_11 = arith.constant 0 : index
    %10 = vector.load %arg2[%c39, %c0_11] : memref<40x192xf32, #tpu.memory_space<vmem>>, vector<1x32xf32>
    %c0_12 = arith.constant 0 : index
    %c0_13 = arith.constant 0 : index
    %11 = vector.load %arg3[%c0_12, %c0_13] : memref<96x32xf32, #tpu.memory_space<vmem>>, vector<32x32xf32>
    %c32_14 = arith.constant 32 : index
    %c0_15 = arith.constant 0 : index
    %12 = vector.load %arg3[%c32_14, %c0_15] : memref<96x32xf32, #tpu.memory_space<vmem>>, vector<64x32xf32>
    %cst = arith.constant dense<0.000000e+00> : vector<16x96xf32>
    %13 = tpu.matmul %0, %1, %cst {dimension_numbers = #tpu.dot_dimension_numbers<[1], [0], [0], [1], [0, 0, 1, 1], [], []>} : vector<16x32xf32>, vector<32x96xf32>, vector<16x96xf32> -> vector<16x96xf32>
    %14 = vector.broadcast %3 : vector<1x96xf32> to vector<16x96xf32>
    %15 = arith.addf %13, %14 : vector<16x96xf32>
    %16 = vector.extract_strided_slice %15 {offsets = [0, 0], sizes = [16, 8], strides = [1, 1]} : vector<16x96xf32> to vector<16x8xf32>
    %17 = vector.extract_strided_slice %15 {offsets = [0, 8], sizes = [16, 8], strides = [1, 1]} : vector<16x96xf32> to vector<16x8xf32>
    %18 = vector.extract_strided_slice %15 {offsets = [0, 16], sizes = [16, 8], strides = [1, 1]} : vector<16x96xf32> to vector<16x8xf32>
    %19 = vector.extract_strided_slice %15 {offsets = [0, 24], sizes = [16, 8], strides = [1, 1]} : vector<16x96xf32> to vector<16x8xf32>
    %20 = tpu.concatenate %16, %17, %18, %19 in 0 : vector<16x8xf32>, vector<16x8xf32>, vector<16x8xf32>, vector<16x8xf32> -> vector<64x8xf32>
    %21 = vector.extract_strided_slice %15 {offsets = [0, 32], sizes = [16, 8], strides = [1, 1]} : vector<16x96xf32> to vector<16x8xf32>
    %22 = vector.extract_strided_slice %15 {offsets = [0, 40], sizes = [16, 8], strides = [1, 1]} : vector<16x96xf32> to vector<16x8xf32>
    %23 = vector.extract_strided_slice %15 {offsets = [0, 48], sizes = [16, 8], strides = [1, 1]} : vector<16x96xf32> to vector<16x8xf32>
    %24 = vector.extract_strided_slice %15 {offsets = [0, 56], sizes = [16, 8], strides = [1, 1]} : vector<16x96xf32> to vector<16x8xf32>
    %25 = tpu.concatenate %21, %22, %23, %24 in 0 : vector<16x8xf32>, vector<16x8xf32>, vector<16x8xf32>, vector<16x8xf32> -> vector<64x8xf32>
    %26 = vector.extract_strided_slice %15 {offsets = [0, 64], sizes = [16, 8], strides = [1, 1]} : vector<16x96xf32> to vector<16x8xf32>
    %27 = vector.extract_strided_slice %15 {offsets = [0, 72], sizes = [16, 8], strides = [1, 1]} : vector<16x96xf32> to vector<16x8xf32>
    %28 = vector.extract_strided_slice %15 {offsets = [0, 80], sizes = [16, 8], strides = [1, 1]} : vector<16x96xf32> to vector<16x8xf32>
    %29 = vector.extract_strided_slice %15 {offsets = [0, 88], sizes = [16, 8], strides = [1, 1]} : vector<16x96xf32> to vector<16x8xf32>
    %30 = tpu.concatenate %26, %27, %28, %29 in 0 : vector<16x8xf32>, vector<16x8xf32>, vector<16x8xf32>, vector<16x8xf32> -> vector<64x8xf32>
    %cst_16 = arith.constant dense<0.000000e+00> : vector<64x64xf32>
    %31 = tpu.matmul %20, %25, %cst_16 {dimension_numbers = #tpu.dot_dimension_numbers<[1], [1], [0], [0], [0, 0, 1, 0], [], []>} : vector<64x8xf32>, vector<64x8xf32>, vector<64x64xf32> -> vector<64x64xf32>
    %c0_17 = arith.constant 0 : index
    %c0_18 = arith.constant 0 : index
    %32 = vector.load %arg1[%c0_17, %c0_18] : memref<64x64xf32, #tpu.memory_space<vmem>>, vector<64x64xf32>
    %33 = arith.addf %31, %32 : vector<64x64xf32>
    %cst_19 = arith.constant dense<0xFF800000> : vector<64xf32>
    %34 = vector.multi_reduction <maximumf>, %33, %cst_19 [1] : vector<64x64xf32> to vector<64xf32>
    %35 = vector.shape_cast %34 : vector<64xf32> to vector<64x1xf32>
    %36 = vector.broadcast %35 : vector<64x1xf32> to vector<64x64xf32>
    %37 = arith.subf %33, %36 : vector<64x64xf32>
    %38 = math.exp %37 : vector<64x64xf32>
    %cst_20 = arith.constant dense<0.000000e+00> : vector<64xf32>
    %39 = vector.multi_reduction <add>, %38, %cst_20 [1] : vector<64x64xf32> to vector<64xf32>
    %40 = vector.shape_cast %39 : vector<64xf32> to vector<64x1xf32>
    %41 = vector.broadcast %40 : vector<64x1xf32> to vector<64x64xf32>
    %42 = arith.divf %38, %41 : vector<64x64xf32>
    %cst_21 = arith.constant dense<0.000000e+00> : vector<64x8xf32>
    %43 = tpu.matmul %42, %30, %cst_21 {dimension_numbers = #tpu.dot_dimension_numbers<[1], [0], [0], [1], [0, 0, 1, 1], [], []>} : vector<64x64xf32>, vector<64x8xf32>, vector<64x8xf32> -> vector<64x8xf32>
    %44 = vector.extract_strided_slice %43 {offsets = [0, 0], sizes = [16, 8], strides = [1, 1]} : vector<64x8xf32> to vector<16x8xf32>
    %45 = vector.extract_strided_slice %43 {offsets = [16, 0], sizes = [16, 8], strides = [1, 1]} : vector<64x8xf32> to vector<16x8xf32>
    %46 = vector.extract_strided_slice %43 {offsets = [32, 0], sizes = [16, 8], strides = [1, 1]} : vector<64x8xf32> to vector<16x8xf32>
    %47 = vector.extract_strided_slice %43 {offsets = [48, 0], sizes = [16, 8], strides = [1, 1]} : vector<64x8xf32> to vector<16x8xf32>
    %48 = tpu.concatenate %44, %45, %46, %47 in 1 : vector<16x8xf32>, vector<16x8xf32>, vector<16x8xf32>, vector<16x8xf32> -> vector<16x32xf32>
    %cst_22 = arith.constant dense<0.000000e+00> : vector<16x32xf32>
    %49 = tpu.matmul %48, %11, %cst_22 {dimension_numbers = #tpu.dot_dimension_numbers<[1], [0], [0], [1], [0, 0, 1, 1], [], []>} : vector<16x32xf32>, vector<32x32xf32>, vector<16x32xf32> -> vector<16x32xf32>
    %50 = vector.broadcast %4 : vector<1x32xf32> to vector<16x32xf32>
    %51 = arith.addf %49, %50 : vector<16x32xf32>
    %52 = arith.addf %0, %51 : vector<16x32xf32>
    %cst_23 = arith.constant dense<0.000000e+00> : vector<16xf32>
    %53 = vector.multi_reduction <add>, %52, %cst_23 [1] : vector<16x32xf32> to vector<16xf32>
    %54 = vector.shape_cast %53 : vector<16xf32> to vector<16x1xf32>
    %cst_24 = arith.constant 3.200000e+01 : f32
    %55 = vector.broadcast %cst_24 : f32 to vector<16x1xf32>
    %56 = arith.divf %54, %55 : vector<16x1xf32>
    %57 = vector.broadcast %56 : vector<16x1xf32> to vector<16x32xf32>
    %58 = arith.subf %52, %57 : vector<16x32xf32>
    %59 = arith.mulf %58, %58 : vector<16x32xf32>
    %cst_25 = arith.constant dense<0.000000e+00> : vector<16xf32>
    %60 = vector.multi_reduction <add>, %59, %cst_25 [1] : vector<16x32xf32> to vector<16xf32>
    %61 = vector.shape_cast %60 : vector<16xf32> to vector<16x1xf32>
    %cst_26 = arith.constant 3.200000e+01 : f32
    %62 = vector.broadcast %cst_26 : f32 to vector<16x1xf32>
    %63 = arith.divf %61, %62 : vector<16x1xf32>
    %64 = vector.broadcast %56 : vector<16x1xf32> to vector<16x32xf32>
    %65 = arith.subf %52, %64 : vector<16x32xf32>
    %cst_27 = arith.constant 9.99999974E-6 : f32
    %66 = vector.broadcast %cst_27 : f32 to vector<16x1xf32>
    %67 = arith.addf %63, %66 : vector<16x1xf32>
    %68 = math.rsqrt %67 : vector<16x1xf32>
    %69 = vector.broadcast %68 : vector<16x1xf32> to vector<16x32xf32>
    %70 = arith.mulf %65, %69 : vector<16x32xf32>
    %71 = vector.broadcast %5 : vector<1x32xf32> to vector<16x32xf32>
    %72 = arith.mulf %70, %71 : vector<16x32xf32>
    %73 = vector.broadcast %6 : vector<1x32xf32> to vector<16x32xf32>
    %74 = arith.addf %72, %73 : vector<16x32xf32>
    %cst_28 = arith.constant dense<0.000000e+00> : vector<16x64xf32>
    %75 = tpu.matmul %74, %2, %cst_28 {dimension_numbers = #tpu.dot_dimension_numbers<[1], [0], [0], [1], [0, 0, 1, 1], [], []>} : vector<16x32xf32>, vector<32x64xf32>, vector<16x64xf32> -> vector<16x64xf32>
    %76 = vector.broadcast %7 : vector<1x64xf32> to vector<16x64xf32>
    %77 = arith.addf %75, %76 : vector<16x64xf32>
    %cst_29 = arith.constant 5.000000e-01 : f32
    %78 = vector.broadcast %cst_29 : f32 to vector<16x64xf32>
    %79 = arith.mulf %78, %77 : vector<16x64xf32>
    %cst_30 = arith.constant 0.707106769 : f32
    %80 = vector.broadcast %cst_30 : f32 to vector<16x64xf32>
    %81 = arith.mulf %77, %80 : vector<16x64xf32>
    %82 = math.erf %81 : vector<16x64xf32>
    %cst_31 = arith.constant 1.000000e+00 : f32
    %83 = vector.broadcast %cst_31 : f32 to vector<16x64xf32>
    %84 = arith.addf %83, %82 : vector<16x64xf32>
    %85 = arith.mulf %79, %84 : vector<16x64xf32>
    %cst_32 = arith.constant dense<0.000000e+00> : vector<16x32xf32>
    %86 = tpu.matmul %85, %12, %cst_32 {dimension_numbers = #tpu.dot_dimension_numbers<[1], [0], [0], [1], [0, 0, 1, 1], [], []>} : vector<16x64xf32>, vector<64x32xf32>, vector<16x32xf32> -> vector<16x32xf32>
    %87 = vector.broadcast %8 : vector<1x32xf32> to vector<16x32xf32>
    %88 = arith.addf %86, %87 : vector<16x32xf32>
    %89 = arith.addf %74, %88 : vector<16x32xf32>
    %cst_33 = arith.constant dense<0.000000e+00> : vector<16xf32>
    %90 = vector.multi_reduction <add>, %89, %cst_33 [1] : vector<16x32xf32> to vector<16xf32>
    %91 = vector.shape_cast %90 : vector<16xf32> to vector<16x1xf32>
    %cst_34 = arith.constant 3.200000e+01 : f32
    %92 = vector.broadcast %cst_34 : f32 to vector<16x1xf32>
    %93 = arith.divf %91, %92 : vector<16x1xf32>
    %94 = vector.broadcast %93 : vector<16x1xf32> to vector<16x32xf32>
    %95 = arith.subf %89, %94 : vector<16x32xf32>
    %96 = arith.mulf %95, %95 : vector<16x32xf32>
    %cst_35 = arith.constant dense<0.000000e+00> : vector<16xf32>
    %97 = vector.multi_reduction <add>, %96, %cst_35 [1] : vector<16x32xf32> to vector<16xf32>
    %98 = vector.shape_cast %97 : vector<16xf32> to vector<16x1xf32>
    %cst_36 = arith.constant 3.200000e+01 : f32
    %99 = vector.broadcast %cst_36 : f32 to vector<16x1xf32>
    %100 = arith.divf %98, %99 : vector<16x1xf32>
    %101 = vector.broadcast %93 : vector<16x1xf32> to vector<16x32xf32>
    %102 = arith.subf %89, %101 : vector<16x32xf32>
    %cst_37 = arith.constant 9.99999974E-6 : f32
    %103 = vector.broadcast %cst_37 : f32 to vector<16x1xf32>
    %104 = arith.addf %100, %103 : vector<16x1xf32>
    %105 = math.rsqrt %104 : vector<16x1xf32>
    %106 = vector.broadcast %105 : vector<16x1xf32> to vector<16x32xf32>
    %107 = arith.mulf %102, %106 : vector<16x32xf32>
    %108 = vector.broadcast %9 : vector<1x32xf32> to vector<16x32xf32>
    %109 = arith.mulf %107, %108 : vector<16x32xf32>
    %110 = vector.broadcast %10 : vector<1x32xf32> to vector<16x32xf32>
    %111 = arith.addf %109, %110 : vector<16x32xf32>
    %c0_38 = arith.constant 0 : index
    %c0_39 = arith.constant 0 : index
    %112 = vector.load %arg4[%c0_38, %c0_39] : memref<16x32xf32, #tpu.memory_space<vmem>>, vector<16x32xf32>
    tpu.vector_store %arg4[%c0_38, %c0_39], %111 {strides = array<i32>} : memref<16x32xf32, #tpu.memory_space<vmem>>, vector<16x32xf32>,
    return
  }
}

</mosaic_0001>

<bundles_post_ra>
// kernel: tpu_custom_call.1
= control target key start
LH: loop header
LB: loop body
LE: loop exit
PB: predicated region body
PF: predicated region fallthrough
CT: control target
= control target key end

     0   :  { %9 = vsyncpa [#allocation3], 0  ;;  %s1360_s0 = inlined_call_operand.vmem [shape: f32[16,32], index: 0, kind: input, shape index: {}]   ;;  %s1361_s1 = inlined_call_operand.hbm [shape: f32[64,64], index: 1, kind: input, shape index: {}]   ;;  %s1362_s2 = inlined_call_operand.vmem [shape: f32[40,192], index: 2, kind: input, shape index: {}]   ;;  %s1363_s3 = inlined_call_operand.vmem [shape: f32[96,32], index: 3, kind: input, shape index: {}]   ;;  %s1364_s4 = inlined_call_operand.hbm [shape: f32[16,32], index: 4, kind: output, shape index: {}]  }
   0x1   :  { %10 = vsyncpa [#allocation4], 0  ;;  %s17_s17 = sshll.u32 %s1361_s1, 4  ;;  %s1003_s18 = smov [#allocation2]   ;;  %s18_s17 = int_to_ptr.hbm [resolvable:$true] %s17_s17 }
   0x2   :  { %s19_s19 = sshll.u32 %s1003_s18, 4  ;;  %s1004_s20 = smov 128   ;;  %s20_s19 = int_to_ptr.vmem [resolvable:$true] %s19_s19 }
   0x3   :  { %s1005_s21 = smov 8  }
   0x4   :  { %25 = dma.hbm_to_vmem [thread:$0]  %s18_s17, 1024, %s20_s19, [#allocation3], %s1004_s20, %s1004_s20, %s1005_s21  }
   0x5   :  { %999 = dma.done.wait [#allocation3], 1024  }
   0x6   :  { %1000 = vsyncadd [#allocation3], 4294966272  ;;  %v39_v0 = vld [vmem:[%s1362_s2 + $0x30] sm:$0xff]  ;;  %v38_v1 = vld [vmem:[%s1362_s2 + $0x20] sm:$0xff]  ;;  %vm64_vm0 = vcmask 261120   ;;  %s1006_s9 = smov 120  }
   0x7   :  { %83 = vmatpush.msra.mxu0 %v39_v0  ;;  %v37_v2 = vld [vmem:[%s1362_s2 + $0x10] sm:$0xff]  ;;  %v36_v3 = vld [vmem:[%s1362_s2] sm:$0xff]  ;;  %v1068_v5 = vld [vmem:[%s1360_s0 + $0x8] sm:$0xff]  ;;  %s1007_s10 = smov 112   ;;  %s1008_s11 = smov 104   ;;  %vm132_vm1 = vcmask 64512  }
   0x8   :  { %v1061_v4 = vld [vmem:[%s1360_s0] sm:$0xff]  ;;  %s1009_s0 = smov 96   ;;  %vm206_vm2 = vcmask 523264   ;;  %v111_v30 = vld [vmem:[#allocation2 + $0x18] sm:$0xff]  ;;  %v109_v31 = vld [vmem:[#allocation2 + $0x8] sm:$0xff]  ;;  %s1010_s12 = smov 64  }
   0x9   :  { %84 = vmatpush.msra.mxu0 %v38_v1  ;;  %v44_v7 = vld [vmem:[%s1362_s2 + $0x40] ss:$0 sm:$0xff]  ;;  %v110_v39 = vld [vmem:[#allocation2 + $0x10] sm:$0xff]  ;;  %v113_v40 = vld [vmem:[#allocation2 + $0x28] sm:$0xff]  ;;  %s1011_s13 = smov 16   ;;  %s1012_s14 = smov 24  }
   0xa   :  { %v108_v25 = vld [vmem:[#allocation2] sm:$0xff]  ;;  %v114_v49 = vld [vmem:[#allocation2 + $0x30] sm:$0xff]  ;;  %v115_v55 = vld [vmem:[#allocation2 + $0x38] sm:$0xff] }
   0xb   :  { %85 = vmatpush.msra.mxu0 %v37_v2  ;;  %v112_v38 = vld [vmem:[#allocation2 + $0x20] sm:$0xff] }
   0xd   :  { %86 = vmatpush.msra.mxu0 %v36_v3 }
   0xe   :  { %823 = vmatmul.msk.f32.vlgmr.msra.gmra.mxu0 %vm64_vm0, %v1061_v4 }
  0x16   :  { %824 = vmatmul.msk.f32.gmra.mxu0 %vm64_vm0, %v1068_v5 }
  0x8b   :  { %v88_v6 = vpop.f32.mrf.mxu0 }
  0x8c   :  { %v1080_v10 = vadd.f32 %v88_v6, %v44_v7 }
  0x93   :  { %v91_v8 = vpop.f32.mrf.mxu0 }
  0x94   :  { %v1075_v9 = vadd.f32 %v91_v8, %v44_v7 }
  0x96   :  { %98 = vrot.lane.b32.xlu2 %v1075_v9, %s1006_s9  ;;  %102 = vrot.lane.b32.xlu1 %v1075_v9, %s1007_s10  ;;  %v900_v59 = vpack.i.bf16 %v1080_v10, %v1075_v9 }
  0x97   :  { %106 = vrot.lane.b32.xlu0 %v1075_v9, %s1008_s11 }
  0x9e   :  { %96 = vrot.lane.b32.xlu2 %v1080_v10, %s1006_s9  ;;  %100 = vrot.lane.b32.xlu1 %v1080_v10, %s1007_s10  ;;  %s1014_s9 = smov [#allocation5]  }
  0x9f   :  { %104 = vrot.lane.b32.xlu0 %v1080_v10, %s1008_s11  ;;  %s808_s10 = sshll.u32 %s1014_s9, 4  ;;  %s809_s10 = int_to_ptr.vmem [resolvable:$true] %s808_s10 }
  0xf0   :  { %v1085_v11 = vpop.permute.xlu2 %98 }
  0xf8   :  { %v1093_v14 = vpop.permute.xlu2 %96 }
 0x108   :  { %v1087_v12 = vpop.permute.xlu1 %102 }
 0x109   :  { %v1089_v13 = vpop.permute.xlu0 %106  ;;  %126 = vrot.lane.b32.xlu2 %v1087_v12, %s1009_s0 }
 0x10a   :  { %130 = vrot.lane.b32.xlu0 %v1089_v13, %s1009_s0 }
 0x110   :  { %v1095_v15 = vpop.permute.xlu1 %100 }
 0x111   :  { %v1097_v16 = vpop.permute.xlu0 %104  ;;  %120 = vrot.lane.b32.xlu2 %v1093_v14, %s1009_s0  ;;  %v890_v53 = vpack.i.bf16 %v1095_v15, %v1087_v12 }
 0x112   :  { %124 = vrot.lane.b32.xlu0 %v1095_v15, %s1009_s0  ;;  %128 = vrot.lane.b32.xlu1 %v1097_v16, %s1009_s0  ;;  %v885_v54 = vpack.i.bf16 %v1097_v16, %v1089_v13 }
 0x11a   :  { %118 = vrot.lane.b32.xlu0 %v1075_v9, %s1009_s0  ;;  %122 = vrot.lane.b32.xlu1 %v1085_v11, %s1009_s0 }
 0x122   :  { %116 = vrot.lane.b32.xlu1 %v1080_v10, %s1009_s0 }
 0x163   :  { %v127_v19 = vpop.permute.xlu2 %126 }
 0x16b   :  { %v121_v22 = vpop.permute.xlu2 %120 }
 0x17c   :  { %v131_v17 = vpop.permute.xlu0 %130 }
 0x17d   :  { %825 = vmatpush.xpose.msk.msrb.mxu0 %vm132_vm1, %v131_v17  ;;  %857 = vmatpush.xpose.msk.msra.mxu1 %vm132_vm1, %v131_v17 }
 0x184   :  { %v129_v18 = vpop.permute.xlu1 %128  ;;  %v125_v20 = vpop.permute.xlu0 %124 }
 0x185   :  { %826 = vmatpush.xpose.msk.msrb.mxu0 %vm132_vm1, %v129_v18  ;;  %858 = vmatpush.xpose.msk.msra.mxu1 %vm132_vm1, %v129_v18 }
 0x189   :  { %827 = vmatpush.xpose.msk.msrb.mxu0 %vm132_vm1, %v127_v19  ;;  %859 = vmatpush.xpose.msk.msra.mxu1 %vm132_vm1, %v127_v19 }
 0x18c   :  { %v123_v21 = vpop.permute.xlu1 %122  ;;  %v119_v23 = vpop.permute.xlu0 %118 }
 0x18d   :  { %828 = vmatpush.xpose.msk.msrb.mxu0 %vm132_vm1, %v125_v20  ;;  %860 = vmatpush.xpose.msk.msra.mxu1 %vm132_vm1, %v125_v20 }
 0x191   :  { %829 = vmatpush.xpose.msk.msrb.mxu0 %vm132_vm1, %v123_v21  ;;  %861 = vmatpush.xpose.msk.msra.mxu1 %vm132_vm1, %v123_v21 }
 0x194   :  { %v117_v24 = vpop.permute.xlu1 %116 }
 0x195   :  { %830 = vmatpush.xpose.msk.msrb.mxu0 %vm132_vm1, %v121_v22  ;;  %862 = vmatpush.xpose.msk.msra.mxu1 %vm132_vm1, %v121_v22 }
 0x199   :  { %831 = vmatpush.xpose.msk.msrb.mxu0 %vm132_vm1, %v119_v23  ;;  %863 = vmatpush.xpose.msk.msra.mxu1 %vm132_vm1, %v119_v23 }
 0x19d   :  { %832 = vmatpush.xpose.msk.msrb.mxu0 %vm132_vm1, %v117_v24  ;;  %864 = vmatpush.xpose.msk.msra.mxu1 %vm132_vm1, %v117_v24 }
 0x1a0   :  { %833 = vmatmul.msk.f32.vlgmr.msrb.gmra.mxu0 %vm132_vm1, %v1080_v10  ;;  %836 = vmatmul.msk.f32.vlgmr.msra.gmra.mxu1 %vm132_vm1, %v1085_v11 }
 0x1a8   :  { %834 = vmatmul.msk.f32.gmra.mxu0 %vm132_vm1, %v1075_v9  ;;  %837 = vmatmul.msk.f32.gmra.mxu1 %vm132_vm1, %v1095_v15 }
 0x1b0   :  { %835 = vmatmul.msk.f32.gmra.mxu0 %vm132_vm1, %v1093_v14  ;;  %838 = vmatmul.msk.f32.gmra.mxu1 %vm132_vm1, %v1087_v12 }
 0x1b8   :  { %839 = vmatmul.msk.f32.gmra.mxu1 %vm132_vm1, %v1097_v16 }
 0x1c0   :  { %840 = vmatmul.msk.f32.gmra.mxu1 %vm132_vm1, %v1089_v13 }
 0x21d   :  { %v182_v26 = vpop.f32.mrf.mxu0  ;;  %v191_v27 = vpop.f32.mrf.mxu1 }
 0x21e   :  { %v183_v28 = vadd.f32 %v182_v26, %v108_v25  ;;  %v192_v32 = vadd.f32 %v191_v27, %v111_v30 }
 0x220   :  { %v207_v29 = vsel %vm206_vm2, %v183_v28, -inf  ;;  %v216_v37 = vsel %vm206_vm2, %v192_v32, -inf }
 0x221   :  { %208 = vmax.xlane.f32.xlu2 %v207_v29  ;;  %v895_v29 = vpack.i.bf16 %v1093_v14, %v1085_v11 }
 0x225   :  { %v185_v33 = vpop.f32.mrf.mxu0  ;;  %v194_v34 = vpop.f32.mrf.mxu1 }
 0x226   :  { %v186_v35 = vadd.f32 %v185_v33, %v109_v31  ;;  %v1140_v41 = vadd.f32 %v194_v34, %v112_v38 }
 0x228   :  { %v210_v36 = vsel %vm206_vm2, %v186_v35, -inf  ;;  %v219_v48 = vsel %vm206_vm2, %v1140_v41, -inf }
 0x229   :  { %211 = vmax.xlane.f32.xlu0 %v210_v36  ;;  %217 = vmax.xlane.f32.xlu2 %v216_v37 }
 0x22d   :  { %v188_v42 = vpop.f32.mrf.mxu0  ;;  %v197_v43 = vpop.f32.mrf.mxu1 }
 0x22e   :  { %v189_v44 = vadd.f32 %v188_v42, %v110_v39  ;;  %v198_v45 = vadd.f32 %v197_v43, %v113_v40 }
 0x230   :  { %v213_v46 = vsel %vm206_vm2, %v189_v44, -inf  ;;  %v222_v47 = vsel %vm206_vm2, %v198_v45, -inf }
 0x231   :  { %214 = vmax.xlane.f32.xlu1 %v213_v46  ;;  %223 = vmax.xlane.f32.xlu0 %v222_v47 }
 0x232   :  { %220 = vmax.xlane.f32.xlu2 %v219_v48 }
 0x235   :  { %v200_v50 = vpop.f32.mrf.mxu1 }
 0x236   :  { %v201_v51 = vadd.f32 %v200_v50, %v114_v49 }
 0x238   :  { %v225_v52 = vsel %vm206_vm2, %v201_v51, -inf }
 0x239   :  { %226 = vmax.xlane.f32.xlu1 %v225_v52 }
 0x23d   :  { %v203_v56 = vpop.f32.mrf.mxu1 }
 0x23e   :  { %v1153_v57 = vadd.f32 %v203_v56, %v115_v55 }
 0x240   :  { %v228_v58 = vsel %vm206_vm2, %v1153_v57, -inf }
 0x245   :  { %891 = vrot.lane.b32.xlu0 %v890_v53, %s1010_s12 }
 0x252   :  { %886 = vrot.lane.b32.xlu1 %v885_v54, %s1010_s12 }
 0x26f   :  { %229 = vmax.xlane.f32.xlu0 %v228_v58 }
 0x283   :  { %901 = vrot.lane.b32.xlu0 %v900_v59, %s1010_s12 }
 0x294   :  { %v209_v60 = vpop.xlane.xlu2 %208 }
 0x295   :  { %v231_v61 = vsub.f32 %v183_v28, %v209_v60 }
 0x297   :  { %v239_v62 = vmul.f32 1.442695, %v231_v61 }
 0x299   :  { %905 = vpow2.f32 %v239_v62 }
 0x29c   :  { %v212_v63 = vpop.xlane.xlu0 %211  ;;  %v218_v0 = vpop.xlane.xlu2 %217 }
 0x29d   :  { %v232_v1 = vsub.f32 %v186_v35, %v212_v63  ;;  %v234_v2 = vsub.f32 %v192_v32, %v218_v0 }
 0x29f   :  { %v1160_v3 = vpop.eup %905  ;;  %v241_v6 = vmul.f32 1.442695, %v232_v1  ;;  %v245_v7 = vmul.f32 1.442695, %v234_v2 }
 0x2a0   :  { %v255_v8 = vsel %vm206_vm2, %v1160_v3, 0.0 }
 0x2a1   :  { %907 = vpow2.f32 %v241_v6  ;;  %256 = vadd.xlane.f32.xlu2 %v255_v8 }
 0x2a2   :  { %909 = vpow2.f32 %v245_v7 }
 0x2a4   :  { %v215_v9 = vpop.xlane.xlu1 %214  ;;  %v224_v10 = vpop.xlane.xlu0 %223 }
 0x2a5   :  { %v233_v12 = vsub.f32 %v189_v44, %v215_v9  ;;  %v236_v16 = vsub.f32 %v198_v45, %v224_v10  ;;  %v221_v11 = vpop.xlane.xlu2 %220 }
 0x2a6   :  { %v235_v14 = vsub.f32 %v1140_v41, %v221_v11 }
 0x2a7   :  { %v1164_v13 = vpop.eup %907  ;;  %v243_v15 = vmul.f32 1.442695, %v233_v12  ;;  %v249_v19 = vmul.f32 1.442695, %v236_v16 }
 0x2a8   :  { %v258_v17 = vsel %vm206_vm2, %v1164_v13, 0.0  ;;  %v1168_v18 = vpop.eup %909  ;;  %v247_v37 = vmul.f32 1.442695, %v235_v14 }
 0x2a9   :  { %911 = vpow2.f32 %v243_v15  ;;  %259 = vadd.xlane.f32.xlu2 %v258_v17  ;;  %v264_v21 = vsel %vm206_vm2, %v1168_v18, 0.0 }
 0x2aa   :  { %913 = vpow2.f32 %v249_v19 }
 0x2ac   :  { %v227_v20 = vpop.xlane.xlu1 %226 }
 0x2ad   :  { %265 = vadd.xlane.f32.xlu0 %v264_v21  ;;  %v237_v23 = vsub.f32 %v201_v51, %v227_v20 }
 0x2af   :  { %v1172_v22 = vpop.eup %911  ;;  %v251_v25 = vmul.f32 1.442695, %v237_v23 }
 0x2b0   :  { %v261_v24 = vsel %vm206_vm2, %v1172_v22, 0.0  ;;  %v1176_v26 = vpop.eup %913 }
 0x2b1   :  { %262 = vadd.xlane.f32.xlu1 %v261_v24  ;;  %915 = vpow2.f32 %v251_v25  ;;  %v270_v27 = vsel %vm206_vm2, %v1176_v26, 0.0 }
 0x2b2   :  { %917 = vpow2.f32 %v247_v37 }
 0x2b7   :  { %v1180_v28 = vpop.eup %915  ;;  %v892_v33 = vpop.permute.xlu0 %891 }
 0x2b8   :  { %v273_v30 = vsel %vm206_vm2, %v1180_v28, 0.0  ;;  %v893_v35 = vunpack.i.l.bf16 %v892_v33  ;;  %v894_v36 = vunpack.i.h.bf16 %v892_v33  ;;  %v1189_v42 = vpop.eup %917 }
 0x2b9   :  { %271 = vadd.xlane.f32.xlu1 %v270_v27  ;;  %v267_v43 = vsel %vm206_vm2, %v1189_v42, 0.0 }
 0x2c1   :  { %274 = vadd.xlane.f32.xlu1 %v273_v30  ;;  %896 = vrot.lane.b32.xlu2 %v895_v29, %s1010_s12  ;;  %s810_s12 = sshll.u32 %s1364_s4, 4  ;;  %s811_s12 = int_to_ptr.hbm [resolvable:$true] %s810_s12 }
 0x2c4   :  { %v887_v31 = vpop.permute.xlu1 %886 }
 0x2c5   :  { %v888_v32 = vunpack.i.l.bf16 %v887_v31  ;;  %v889_v34 = vunpack.i.h.bf16 %v887_v31 }
 0x2c7   :  { %455 = vmatpush.msra.mxu2 %v888_v32  ;;  %865 = vmatpush.msra.mxu3 %v888_v32 }
 0x2c9   :  { %456 = vmatpush.msra.mxu2 %v889_v34  ;;  %866 = vmatpush.msra.mxu3 %v889_v34 }
 0x2cb   :  { %457 = vmatpush.msra.mxu2 %v893_v35  ;;  %867 = vmatpush.msra.mxu3 %v893_v35 }
 0x2cd   :  { %458 = vmatpush.msra.mxu2 %v894_v36  ;;  %868 = vmatpush.msra.mxu3 %v894_v36 }
 0x2e2   :  { %v230_v38 = vpop.xlane.xlu0 %229 }
 0x2e3   :  { %v238_v39 = vsub.f32 %v1153_v57, %v230_v38 }
 0x2e5   :  { %v253_v40 = vmul.f32 1.442695, %v238_v39 }
 0x2e7   :  { %919 = vpow2.f32 %v253_v40 }
 0x2ea   :  { %268 = vadd.xlane.f32.xlu2 %v267_v43 }
 0x2ed   :  { %v1193_v44 = vpop.eup %919 }
 0x2ee   :  { %v276_v45 = vsel %vm206_vm2, %v1193_v44, 0.0 }
 0x2ef   :  { %277 = vadd.xlane.f32.xlu0 %v276_v45 }
 0x2f5   :  { %v902_v46 = vpop.permute.xlu0 %901 }
 0x2f6   :  { %v903_v2 = vunpack.i.l.bf16 %v902_v46  ;;  %v904_v12 = vunpack.i.h.bf16 %v902_v46 }
 0x314   :  { %v257_v41 = vpop.xlane.xlu2 %256 }
 0x315   :  { %921 = vrcp.f32 %v257_v41  ;;  %v290_v55 = vand.u32 2147483648, %v257_v41  ;;  %vm284_vm4 = vweird.f32 %v257_v41  ;;  %v288_v59 = vand.u32 2147483647, %v257_v41 }
 0x317   :  { %v291_v63 = vor.u32 1.1754944e-38, %v290_v55  ;;  %vm289_vm6 = vcmp.eq.f32.partialorder %v288_v59, 8.507059e+37 }
 0x31b   :  { %v922_v47 = vpop.eup %921 }
 0x31c   :  { %v280_v48 = vmul.f32 %v922_v47, %v257_v41  ;;  %v260_v49 = vpop.xlane.xlu2 %259  ;;  %vm285_vm3 = vweird.f32 %v922_v47 }
 0x31d   :  { %923 = vrcp.f32 %v260_v49  ;;  %vm286_vm5 = vmor %vm284_vm4, %vm285_vm3  ;;  %v305_v10 = vand.u32 2147483648, %v260_v49  ;;  %vm299_vm8 = vweird.f32 %v260_v49  ;;  %v303_v17 = vand.u32 2147483647, %v260_v49 }
 0x31e   :  { %v281_v50 = vsub.f32 1.0, %v280_v48 }
 0x31f   :  { %v306_v23 = vor.u32 1.1754944e-38, %v305_v10  ;;  %vm304_vm10 = vcmp.eq.f32.partialorder %v303_v17, 8.507059e+37 }
 0x320   :  { %v282_v51 = vmul.f32 %v922_v47, %v281_v50  ;;  %v1197_v52 = vpop.xlane.xlu0 %265 }
 0x321   :  { %925 = vrcp.f32 %v1197_v52  ;;  %v335_v11 = vand.u32 2147483648, %v1197_v52  ;;  %vm329_vm3 = vweird.f32 %v1197_v52  ;;  %v333_v37 = vand.u32 2147483647, %v1197_v52 }
 0x322   :  { %v283_v53 = vadd.f32 %v922_v47, %v282_v51 }
 0x323   :  { %v924_v54 = vpop.eup %923  ;;  %v336_v38 = vor.u32 1.1754944e-38, %v335_v11 }
 0x324   :  { %v295_v56 = vmul.f32 %v924_v54, %v260_v49  ;;  %v263_v57 = vpop.xlane.xlu1 %262  ;;  %v897_v58 = vpop.permute.xlu2 %896  ;;  %v287_v62 = vsel %vm286_vm5, %v922_v47, %v283_v53  ;;  %vm300_vm7 = vweird.f32 %v924_v54  ;;  %vm334_vm5 = vcmp.eq.f32.partialorder %v333_v37, 8.507059e+37  ;;  %v54_v37 = vld [vmem:[%s1363_s3 + $0x10] sm:$0xff] }
 0x325   :  { %927 = vrcp.f32 %v263_v57  ;;  %v898_v60 = vunpack.i.l.bf16 %v897_v58  ;;  %v899_v0 = vunpack.i.h.bf16 %v897_v58  ;;  %v292_v6 = vsel %vm289_vm6, %v291_v63, %v287_v62  ;;  %vm301_vm9 = vmor %vm299_vm8, %vm300_vm7 }
 0x326   :  { %v296_v61 = vsub.f32 1.0, %v295_v56  ;;  %v293_v16 = vmul.f32 %v1160_v3, %v292_v6  ;;  %v320_v30 = vand.u32 2147483648, %v263_v57  ;;  %vm314_vm12 = vweird.f32 %v263_v57 }
 0x327   :  { %459 = vmatpush.msra.mxu2 %v898_v60  ;;  %869 = vmatpush.msra.mxu3 %v898_v60  ;;  %v926_v7 = vpop.eup %925  ;;  %v318_v31 = vand.u32 2147483647, %v263_v57 }
 0x328   :  { %v297_v1 = vmul.f32 %v924_v54, %v296_v61  ;;  %v325_v19 = vmul.f32 %v926_v7, %v1197_v52  ;;  %v321_v34 = vor.u32 1.1754944e-38, %v320_v30  ;;  %vm330_vm15 = vweird.f32 %v926_v7 }
 0x329   :  { %460 = vmatpush.msra.mxu2 %v899_v0  ;;  %870 = vmatpush.msra.mxu3 %v899_v0  ;;  %vm319_vm14 = vcmp.eq.f32.partialorder %v318_v31, 8.507059e+37  ;;  %vm331_vm4 = vmor %vm329_vm3, %vm330_vm15 }
 0x32a   :  { %v298_v8 = vadd.f32 %v924_v54, %v297_v1  ;;  %v326_v27 = vsub.f32 1.0, %v325_v19 }
 0x32b   :  { %v928_v9 = vpop.eup %927  ;;  %461 = vmatpush.msra.mxu2 %v903_v2  ;;  %871 = vmatpush.msra.mxu3 %v903_v2 }
 0x32c   :  { %v310_v15 = vmul.f32 %v928_v9, %v263_v57  ;;  %v302_v21 = vsel %vm301_vm9, %v924_v54, %v298_v8  ;;  %vm315_vm11 = vweird.f32 %v928_v9  ;;  %v327_v32 = vmul.f32 %v926_v7, %v326_v27  ;;  %v272_v43 = vpop.xlane.xlu1 %271 }
 0x32d   :  { %462 = vmatpush.msra.mxu2 %v904_v12  ;;  %872 = vmatpush.msra.mxu3 %v904_v12  ;;  %v307_v25 = vsel %vm304_vm10, %v306_v23, %v302_v21  ;;  %vm316_vm13 = vmor %vm314_vm12, %vm315_vm11  ;;  %929 = vrcp.f32 %v272_v43  ;;  %v365_v59 = vand.u32 2147483648, %v272_v43  ;;  %vm359_vm12 = vweird.f32 %v272_v43 }
 0x32e   :  { %v311_v20 = vsub.f32 1.0, %v310_v15  ;;  %841 = vmatmul.msk.f32.vlgmr.msra.gmra.mxu2 %vm206_vm2, %v293_v16  ;;  %v308_v3 = vmul.f32 %v1164_v13, %v307_v25  ;;  %v328_v36 = vadd.f32 %v926_v7, %v327_v32  ;;  %v363_v10 = vand.u32 2147483647, %v272_v43 }
 0x32f   :  { %v366_v19 = vor.u32 1.1754944e-38, %v365_v59 }
 0x330   :  { %v312_v24 = vmul.f32 %v928_v9, %v311_v20  ;;  %v332_v13 = vsel %vm331_vm4, %v926_v7, %v328_v36  ;;  %vm364_vm4 = vcmp.eq.f32.partialorder %v363_v10, 8.507059e+37 }
 0x331   :  { %v337_v39 = vsel %vm334_vm5, %v336_v38, %v332_v13  ;;  %v53_v13 = vld [vmem:[%s1363_s3 + $0x8] sm:$0xff]  ;;  %v52_v38 = vld [vmem:[%s1363_s3] sm:$0xff] }
 0x332   :  { %v313_v29 = vadd.f32 %v928_v9, %v312_v24  ;;  %v338_v40 = vmul.f32 %v1168_v18, %v337_v39 }
 0x333   :  { %v930_v45 = vpop.eup %929 }
 0x334   :  { %v317_v33 = vsel %vm316_vm13, %v928_v9, %v313_v29  ;;  %v1212_v41 = vpop.xlane.xlu1 %274  ;;  %vm360_vm9 = vweird.f32 %v930_v45 }
 0x335   :  { %v322_v35 = vsel %vm319_vm14, %v321_v34, %v317_v33  ;;  %vm361_vm14 = vmor %vm359_vm12, %vm360_vm9  ;;  %v378_v29 = vand.u32 2147483647, %v1212_v41  ;;  %vm514_vm9 = vcmask 130048  }
 0x336   :  { %842 = vmatmul.msk.f32.gmra.mxu2 %vm206_vm2, %v308_v3  ;;  %v323_v14 = vmul.f32 %v1172_v22, %v322_v35  ;;  %v355_v22 = vmul.f32 %v930_v45, %v272_v43 }
 0x338   :  { %v356_v49 = vsub.f32 1.0, %v355_v22 }
 0x33a   :  { %v357_v18 = vmul.f32 %v930_v45, %v356_v49 }
 0x33c   :  { %v358_v63 = vadd.f32 %v930_v45, %v357_v18 }
 0x33e   :  { %843 = vmatmul.msk.f32.gmra.mxu2 %vm206_vm2, %v323_v14  ;;  %v362_v17 = vsel %vm361_vm14, %v930_v45, %v358_v63 }
 0x33f   :  { %v367_v24 = vsel %vm364_vm4, %v366_v19, %v362_v17  ;;  %v43_v17 = vld [vmem:[%s1362_s2 + $0x38] sm:$0xff]  ;;  %v42_v19 = vld [vmem:[%s1362_s2 + $0x28] sm:$0xff] }
 0x340   :  { %v368_v27 = vmul.f32 %v1176_v26, %v367_v24 }
 0x346   :  { %844 = vmatmul.msk.f32.gmra.mxu2 %vm206_vm2, %v338_v40 }
 0x35d   :  { %v269_v46 = vpop.xlane.xlu2 %268 }
 0x35e   :  { %931 = vrcp.f32 %v269_v46  ;;  %v350_v53 = vand.u32 2147483648, %v269_v46  ;;  %v348_v57 = vand.u32 2147483647, %v269_v46  ;;  %vm344_vm7 = vweird.f32 %v269_v46 }
 0x35f   :  { %933 = vrcp.f32 %v1212_v41 }
 0x360   :  { %v351_v61 = vor.u32 1.1754944e-38, %v350_v53  ;;  %vm349_vm10 = vcmp.eq.f32.partialorder %v348_v57, 8.507059e+37 }
 0x362   :  { %v278_v47 = vpop.xlane.xlu0 %277 }
 0x363   :  { %935 = vrcp.f32 %v278_v47  ;;  %v395_v1 = vand.u32 2147483648, %v278_v47  ;;  %v393_v8 = vand.u32 2147483647, %v278_v47  ;;  %vm389_vm13 = vweird.f32 %v278_v47 }
 0x364   :  { %v932_v48 = vpop.eup %931 }
 0x365   :  { %v340_v50 = vmul.f32 %v932_v48, %v269_v46  ;;  %v934_v51 = vpop.eup %933  ;;  %vm345_vm6 = vweird.f32 %v932_v48  ;;  %v396_v16 = vor.u32 1.1754944e-38, %v395_v1  ;;  %vm394_vm3 = vcmp.eq.f32.partialorder %v393_v8, 8.507059e+37 }
 0x366   :  { %v370_v55 = vmul.f32 %v934_v51, %v1212_v41  ;;  %vm346_vm8 = vmor %vm344_vm7, %vm345_vm6  ;;  %vm375_vm5 = vweird.f32 %v934_v51  ;;  %vm374_vm6 = vweird.f32 %v1212_v41 }
 0x367   :  { %v341_v52 = vsub.f32 1.0, %v340_v50  ;;  %vm376_vm7 = vmor %vm374_vm6, %vm375_vm5 }
 0x368   :  { %v371_v0 = vsub.f32 1.0, %v370_v55 }
 0x369   :  { %v936_v54 = vpop.eup %935  ;;  %v342_v56 = vmul.f32 %v932_v48, %v341_v52  ;;  %v45_v52 = vld [vmem:[%s1362_s2 + $0x41] ss:$0 sm:$0xff] }
 0x36a   :  { %v385_v58 = vmul.f32 %v936_v54, %v278_v47  ;;  %vm390_vm11 = vweird.f32 %v936_v54  ;;  %v372_v15 = vmul.f32 %v934_v51, %v371_v0 }
 0x36b   :  { %v343_v60 = vadd.f32 %v932_v48, %v342_v56  ;;  %vm391_vm15 = vmor %vm389_vm13, %vm390_vm11 }
 0x36c   :  { %v386_v62 = vsub.f32 1.0, %v385_v58  ;;  %v373_v25 = vadd.f32 %v934_v51, %v372_v15 }
 0x36d   :  { %v347_v2 = vsel %vm346_vm8, %v932_v48, %v343_v60  ;;  %vm379_vm8 = vcmp.eq.f32.partialorder %v378_v29, 8.507059e+37  ;;  %v1013_v60 = vmov 32.0  }
 0x36e   :  { %v387_v6 = vmul.f32 %v936_v54, %v386_v62  ;;  %v352_v7 = vsel %vm349_vm10, %v351_v61, %v347_v2  ;;  %v377_v30 = vsel %vm376_vm7, %v934_v51, %v373_v25  ;;  %vm517_vm10 = vcmask 195584  }
 0x36f   :  { %v353_v9 = vmul.f32 %v1189_v42, %v352_v7  ;;  %v380_v42 = vand.u32 2147483648, %v1212_v41  ;;  %937 = vrcp.f32 %v1013_v60  ;;  %v61_v60 = vld [vmem:[%s1363_s3 + $0x48] sm:$0xff] }
 0x370   :  { %v388_v12 = vadd.f32 %v936_v54, %v387_v6 }
 0x371   :  { %845 = vmatmul.msk.f32.gmra.mxu2 %vm206_vm2, %v353_v9  ;;  %v381_v3 = vor.u32 1.1754944e-38, %v380_v42 }
 0x372   :  { %v392_v20 = vsel %vm391_vm15, %v936_v54, %v388_v12 }
 0x373   :  { %v397_v21 = vsel %vm394_vm3, %v396_v16, %v392_v20  ;;  %v41_v20 = vld [vmem:[%s1362_s2 + $0x18] sm:$0xff] }
 0x374   :  { %v398_v23 = vmul.f32 %v1193_v44, %v397_v21  ;;  %v382_v44 = vsel %vm379_vm8, %v381_v3, %v377_v30  ;;  %v40_v21 = vld [vmem:[%s1362_s2 + $0x8] sm:$0xff] }
 0x375   :  { %v383_v31 = vmul.f32 %v1180_v28, %v382_v44  ;;  %v55_v28 = vld [vmem:[%s1363_s3 + $0x18] sm:$0xff]  ;;  %v938_v61 = vpop.eup %937 }
 0x376   :  { %848 = vmatmul.msk.f32.vlgmr.msra.gmra.mxu3 %vm206_vm2, %v398_v23  ;;  %v558_v62 = vmul.f32 32.0, %v938_v61 }
 0x377   :  { %538 = vmatpush.msrb.mxu3 %v55_v28  ;;  %v47_v28 = vld [vmem:[%s1362_s2 + $0x43] ss:$0 sm:$0xff] }
 0x378   :  { %v559_v63 = vsub.f32 1.0, %v558_v62 }
 0x379   :  { %846 = vmatmul.msk.f32.gmra.mxu2 %vm206_vm2, %v368_v27  ;;  %539 = vmatpush.msrb.mxu3 %v54_v37 }
 0x37a   :  { %v560_v0 = vmul.f32 %v938_v61, %v559_v63 }
 0x37b   :  { %540 = vmatpush.msrb.mxu3 %v53_v13 }
 0x37c   :  { %v561_v1 = vadd.f32 %v938_v61, %v560_v0  ;;  %v60_v0 = vld [vmem:[%s1363_s3 + $0x40] sm:$0xff] }
 0x37d   :  { %541 = vmatpush.msrb.mxu3 %v52_v38 }
 0x37f   :  { %624 = vmatpush.msra.mxu3 %v43_v17 }
 0x381   :  { %847 = vmatmul.msk.f32.gmra.mxu2 %vm206_vm2, %v383_v31  ;;  %625 = vmatpush.msra.mxu3 %v42_v19  ;;  %v57_v19 = vld [vmem:[%s1363_s3 + $0x28] sm:$0xff] }
 0x383   :  { %626 = vmatpush.msra.mxu3 %v41_v20 }
 0x385   :  { %627 = vmatpush.msra.mxu3 %v40_v21 }
 0x3b1   :  { %v464_v32 = vpop.f32.mrf.mxu2 }
 0x3b9   :  { %v467_v33 = vpop.f32.mrf.mxu2 }
 0x3c1   :  { %v470_v34 = vpop.f32.mrf.mxu2 }
 0x3c2   :  { %490 = vrot.lane.b32.xlu2 %v470_v34, %s1005_s21 }
 0x3c9   :  { %v473_v35 = vpop.f32.mrf.mxu2 }
 0x3ca   :  { %492 = vrot.lane.b32.xlu2 %v473_v35, %s1005_s21 }
 0x3f4   :  { %v476_v26 = vpop.f32.mrf.mxu2 }
 0x3f5   :  { %498 = vrot.lane.b32.xlu1 %v476_v26, %s1011_s13  ;;  %v46_v26 = vld [vmem:[%s1362_s2 + $0x42] ss:$0 sm:$0xff] }
 0x3f9   :  { %v485_v36 = vpop.f32.mrf.mxu3 }
 0x3fc   :  { %v479_v11 = vpop.f32.mrf.mxu2 }
 0x3fd   :  { %508 = vrot.lane.b32.xlu1 %v485_v36, %s1012_s14 }
 0x404   :  { %v482_v14 = vpop.f32.mrf.mxu2 }
 0x405   :  { %506 = vrot.lane.b32.xlu0 %v482_v14, %s1012_s14 }
 0x40d   :  { %500 = vrot.lane.b32.xlu0 %v479_v11, %s1011_s13 }
 0x41c   :  { %v491_v39 = vpop.permute.xlu2 %490 }
 0x41d   :  { %v512_v43 = vsel %vm132_vm1, %v464_v32, %v491_v39 }
 0x424   :  { %v493_v22 = vpop.permute.xlu2 %492 }
 0x425   :  { %v513_v47 = vsel %vm132_vm1, %v467_v33, %v493_v22  ;;  %vm562_vm1 = vweird.f32 %v938_v61  ;;  %v48_v22 = vld [vmem:[%s1362_s2 + $0x44] ss:$0 sm:$0xff] }
 0x426   :  { %v1252_v2 = vsel %vm562_vm1, %v938_v61, %v561_v1 }
 0x467   :  { %v499_v40 = vpop.permute.xlu1 %498 }
 0x468   :  { %v515_v45 = vsel %vm514_vm9, %v512_v43, %v499_v40 }
 0x46f   :  { %v509_v49 = vpop.permute.xlu1 %508 }
 0x477   :  { %v507_v41 = vpop.permute.xlu0 %506 }
 0x478   :  { %v518_v46 = vsel %vm517_vm10, %v515_v45, %v507_v41 }
 0x479   :  { %849 = vmatmul.msk.f32.vlgmr.msrb.gmra.mxu3 %vm64_vm0, %v518_v46 }
 0x47f   :  { %v501_v48 = vpop.permute.xlu0 %500 }
 0x480   :  { %v516_v50 = vsel %vm514_vm9, %v513_v47, %v501_v48 }
 0x481   :  { %v519_v51 = vsel %vm517_vm10, %v516_v50, %v509_v49 }
 0x482   :  { %850 = vmatmul.msk.f32.gmra.mxu3 %vm64_vm0, %v519_v51 }
 0x4fc   :  { %v543_v18 = vpop.f32.mrf.mxu3 }
 0x4fd   :  { %v544_v53 = vadd.f32 %v543_v18, %v45_v52 }
 0x4ff   :  { %v549_v54 = vadd.f32 %v544_v53, %v1061_v4 }
 0x501   :  { %v551_v55 = vsel %vm64_vm0, %v549_v54, 0.0 }
 0x502   :  { %552 = vadd.xlane.f32.xlu2 %v551_v55 }
 0x505   :  { %v546_v56 = vpop.f32.mrf.mxu3 }
 0x506   :  { %v547_v57 = vadd.f32 %v546_v56, %v45_v52  ;;  %v63_v52 = vld [vmem:[%s1363_s3 + $0x58] sm:$0xff]  ;;  %v62_v56 = vld [vmem:[%s1363_s3 + $0x50] sm:$0xff] }
 0x507   :  { %737 = vmatpush.msrb.mxu3 %v63_v52 }
 0x508   :  { %v550_v58 = vadd.f32 %v547_v57, %v1068_v5 }
 0x509   :  { %738 = vmatpush.msrb.mxu3 %v62_v56 }
 0x50a   :  { %v554_v59 = vsel %vm64_vm0, %v550_v58, 0.0 }
 0x50b   :  { %555 = vadd.xlane.f32.xlu0 %v554_v59  ;;  %739 = vmatpush.msrb.mxu3 %v61_v60 }
 0x50d   :  { %740 = vmatpush.msrb.mxu3 %v60_v0 }
 0x575   :  { %v553_v4 = vpop.xlane.xlu2 %552 }
 0x576   :  { %v564_v6 = vmul.f32 %v1252_v2, %v553_v4 }
 0x578   :  { %v566_v7 = vsub.f32 %v549_v54, %v564_v6 }
 0x57a   :  { %v568_v8 = vmul.f32 %v566_v7, %v566_v7 }
 0x57c   :  { %v570_v5 = vsel %vm64_vm0, %v568_v8, 0.0 }
 0x57d   :  { %571 = vadd.xlane.f32.xlu1 %v570_v5 }
 0x57e   :  { %v556_v9 = vpop.xlane.xlu0 %555 }
 0x57f   :  { %v565_v10 = vmul.f32 %v1252_v2, %v556_v9 }
 0x581   :  { %v567_v12 = vsub.f32 %v550_v58, %v565_v10  ;;  %v58_v10 = vld [vmem:[%s1363_s3 + $0x30] sm:$0xff] }
 0x583   :  { %v569_v15 = vmul.f32 %v567_v12, %v567_v12 }
 0x585   :  { %v573_v16 = vsel %vm64_vm0, %v569_v15, 0.0 }
 0x586   :  { %574 = vadd.xlane.f32.xlu2 %v573_v16 }
 0x5f0   :  { %v572_v23 = vpop.xlane.xlu1 %571 }
 0x5f1   :  { %v576_v24 = vmul.f32 %v572_v23, %v1252_v2 }
 0x5f3   :  { %v578_v25 = vadd.f32 1e-05, %v576_v24  ;;  %v56_v24 = vld [vmem:[%s1363_s3 + $0x20] sm:$0xff] }
 0x5f5   :  { %939 = vrsqrt.f32 %v578_v25  ;;  %vm586_vm12 = vweird.f32 %v578_v25 }
 0x5f9   :  { %v575_v42 = vpop.xlane.xlu2 %574 }
 0x5fa   :  { %v577_v27 = vmul.f32 %v575_v42, %v1252_v2 }
 0x5fb   :  { %v940_v29 = vpop.eup %939 }
 0x5fc   :  { %v581_v30 = vmul.f32 %v940_v29, %v578_v25  ;;  %v579_v3 = vadd.f32 1e-05, %v577_v27  ;;  %vm587_vm11 = vweird.f32 %v940_v29 }
 0x5fd   :  { %vm588_vm13 = vmor %vm586_vm12, %vm587_vm11 }
 0x5fe   :  { %v582_v44 = vmul.f32 %v940_v29, %v581_v30  ;;  %941 = vrsqrt.f32 %v579_v3  ;;  %vm596_vm15 = vweird.f32 %v579_v3 }
 0x600   :  { %v583_v31 = vmul.f32 0.5, %v582_v44 }
 0x602   :  { %v584_v32 = vsub.f32 1.5, %v583_v31 }
 0x604   :  { %v942_v33 = vpop.eup %941  ;;  %v585_v34 = vmul.f32 %v940_v29, %v584_v32 }
 0x605   :  { %v591_v35 = vmul.f32 %v942_v33, %v579_v3  ;;  %vm597_vm14 = vweird.f32 %v942_v33 }
 0x606   :  { %v589_v36 = vsel %vm588_vm13, %v940_v29, %v585_v34  ;;  %vm598_vm3 = vmor %vm596_vm15, %vm597_vm14 }
 0x607   :  { %v600_v11 = vmul.f32 %v589_v36, %v566_v7  ;;  %v592_v14 = vmul.f32 %v942_v33, %v591_v35  ;;  %v59_v7 = vld [vmem:[%s1363_s3 + $0x38] sm:$0xff] }
 0x608   :  { %741 = vmatpush.msrb.mxu3 %v59_v7 }
 0x609   :  { %v602_v37 = vmul.f32 %v600_v11, %v46_v26  ;;  %v593_v13 = vmul.f32 0.5, %v592_v14 }
 0x60a   :  { %742 = vmatpush.msrb.mxu3 %v58_v10 }
 0x60b   :  { %v594_v38 = vsub.f32 1.5, %v593_v13  ;;  %v1278_v39 = vadd.f32 %v602_v37, %v47_v28 }
 0x60c   :  { %743 = vmatpush.msrb.mxu3 %v57_v19 }
 0x60d   :  { %v595_v40 = vmul.f32 %v942_v33, %v594_v38  ;;  %851 = vmatmul.msk.f32.vlgmr.msra.gmra.mxu3 %vm64_vm0, %v1278_v39 }
 0x60e   :  { %744 = vmatpush.msrb.mxu3 %v56_v24 }
 0x60f   :  { %v599_v43 = vsel %vm598_vm3, %v942_v33, %v595_v40 }
 0x610   :  { %v601_v45 = vmul.f32 %v599_v43, %v567_v12 }
 0x612   :  { %v603_v41 = vmul.f32 %v601_v45, %v46_v26 }
 0x614   :  { %v1282_v46 = vadd.f32 %v603_v41, %v47_v28 }
 0x616   :  { %852 = vmatmul.msk.f32.gmra.mxu3 %vm64_vm0, %v1282_v46 }
 0x690   :  { %v629_v47 = vpop.f32.mrf.mxu3 }
 0x691   :  { %v1289_v48 = vadd.f32 %v629_v47, %v48_v22 }
 0x693   :  { %v1292_v49 = vmul.f32 0.70710677, %v1289_v48 }
 0x695   :  { %v639_v50 = vmul.f32 %v1292_v49, %v1292_v49 }
 0x697   :  { %v640_v51 = vmin.f32 %v639_v50, 16.0 }
 0x699   :  { %v641_v18 = vmul.f32 2.1237322e-06, %v640_v51  ;;  %v652_v53 = vmul.f32 3.8918573e-05, %v640_v51  ;;  %v632_v54 = vpop.f32.mrf.mxu3 }
 0x69a   :  { %v1299_v55 = vadd.f32 %v632_v54, %v48_v22 }
 0x69b   :  { %v642_v57 = vadd.f32 0.00028619796, %v641_v18  ;;  %v653_v58 = vadd.f32 0.001143296, %v652_v53 }
 0x69c   :  { %v1305_v59 = vmul.f32 0.70710677, %v1299_v55 }
 0x69d   :  { %v643_v61 = vmul.f32 %v642_v57, %v640_v51  ;;  %v654_v62 = vmul.f32 %v653_v58, %v640_v51 }
 0x69e   :  { %v679_v63 = vmul.f32 %v1305_v59, %v1305_v59 }
 0x69f   :  { %v655_v1 = vadd.f32 0.014752088, %v654_v62  ;;  %v644_v4 = vadd.f32 0.0036580483, %v643_v61 }
 0x6a0   :  { %v680_v6 = vmin.f32 %v679_v63, 16.0 }
 0x6a1   :  { %v656_v8 = vmul.f32 %v655_v1, %v640_v51  ;;  %v645_v15 = vmul.f32 %v644_v4, %v640_v51  ;;  %v635_v4 = vmul.f32 0.5, %v1289_v48  ;;  %v49_v48 = vld [vmem:[%s1362_s2 + $0x45] ss:$0 sm:$0xff] }
 0x6a2   :  { %v681_v5 = vmul.f32 2.1237322e-06, %v680_v6  ;;  %v692_v9 = vmul.f32 3.8918573e-05, %v680_v6 }
 0x6a3   :  { %v657_v12 = vadd.f32 0.112945676, %v656_v8  ;;  %v646_v42 = vadd.f32 0.05243302, %v645_v15 }
 0x6a4   :  { %v682_v16 = vadd.f32 0.00028619796, %v681_v5  ;;  %v693_v17 = vadd.f32 0.001143296, %v692_v9 }
 0x6a5   :  { %v658_v20 = vmul.f32 %v657_v12, %v640_v51  ;;  %v647_v31 = vmul.f32 %v646_v42, %v640_v51 }
 0x6a6   :  { %v683_v21 = vmul.f32 %v682_v16, %v680_v6  ;;  %v694_v23 = vmul.f32 %v693_v17, %v680_v6  ;;  %v636_v16 = vmul.f32 0.5, %v1299_v55 }
 0x6a7   :  { %v659_v25 = vadd.f32 0.4994258, %v658_v20  ;;  %v648_v35 = vadd.f32 0.18741608, %v647_v31 }
 0x6a8   :  { %v695_v27 = vadd.f32 0.014752088, %v694_v23  ;;  %v684_v30 = vadd.f32 0.0036580483, %v683_v21 }
 0x6a9   :  { %v660_v29 = vmul.f32 %v659_v25, %v640_v51  ;;  %v649_v28 = vmul.f32 %v648_v35, %v640_v51 }
 0x6aa   :  { %v696_v3 = vmul.f32 %v695_v27, %v680_v6  ;;  %v685_v33 = vmul.f32 %v684_v30, %v680_v6 }
 0x6ab   :  { %v661_v44 = vadd.f32 1.0, %v660_v29  ;;  %v650_v45 = vadd.f32 1.1283791, %v649_v28 }
 0x6ac   :  { %v697_v32 = vadd.f32 0.112945676, %v696_v3  ;;  %v686_v36 = vadd.f32 0.05243302, %v685_v33 }
 0x6ad   :  { %943 = vrcp.f32 %v661_v44  ;;  %v673_v43 = vand.u32 2147483648, %v661_v44  ;;  %v671_v22 = vand.u32 2147483647, %v661_v44  ;;  %vm667_vm5 = vweird.f32 %v661_v44 }
 0x6ae   :  { %v698_v34 = vmul.f32 %v697_v32, %v680_v6  ;;  %v687_v38 = vmul.f32 %v686_v36, %v680_v6  ;;  %v651_v53 = vmul.f32 %v650_v45, %v1292_v49 }
 0x6af   :  { %v674_v52 = vor.u32 1.1754944e-38, %v673_v43  ;;  %vm672_vm7 = vcmp.eq.f32.partialorder %v671_v22, 8.507059e+37  ;;  %v50_v22 = vld [vmem:[%s1362_s2 + $0x46] ss:$0 sm:$0xff] }
 0x6b0   :  { %v699_v26 = vadd.f32 0.4994258, %v698_v34  ;;  %v688_v47 = vadd.f32 0.18741608, %v687_v38 }
 0x6b2   :  { %v700_v11 = vmul.f32 %v699_v26, %v680_v6  ;;  %v689_v56 = vmul.f32 %v688_v47, %v680_v6 }
 0x6b3   :  { %v944_v14 = vpop.eup %943 }
 0x6b4   :  { %v663_v37 = vmul.f32 %v944_v14, %v661_v44  ;;  %v701_v13 = vadd.f32 1.0, %v700_v11  ;;  %vm668_vm4 = vweird.f32 %v944_v14  ;;  %v690_v63 = vadd.f32 1.1283791, %v689_v56 }
 0x6b5   :  { %vm669_vm6 = vmor %vm667_vm5, %vm668_vm4 }
 0x6b6   :  { %v664_v40 = vsub.f32 1.0, %v663_v37  ;;  %945 = vrcp.f32 %v701_v13  ;;  %v713_v62 = vand.u32 2147483648, %v701_v13  ;;  %v711_v1 = vand.u32 2147483647, %v701_v13 }
 0x6b7   :  { %vm707_vm9 = vweird.f32 %v701_v13  ;;  %v691_v9 = vmul.f32 %v690_v63, %v1305_v59 }
 0x6b8   :  { %v665_v41 = vmul.f32 %v944_v14, %v664_v40  ;;  %v714_v49 = vor.u32 1.1754944e-38, %v713_v62  ;;  %vm712_vm1 = vcmp.eq.f32.partialorder %v711_v1, 8.507059e+37 }
 0x6ba   :  { %v666_v50 = vadd.f32 %v944_v14, %v665_v41 }
 0x6bc   :  { %v946_v18 = vpop.eup %945  ;;  %v670_v54 = vsel %vm669_vm6, %v944_v14, %v666_v50 }
 0x6bd   :  { %v675_v51 = vsel %vm672_vm7, %v674_v52, %v670_v54  ;;  %v703_v57 = vmul.f32 %v946_v18, %v701_v13  ;;  %vm708_vm8 = vweird.f32 %v946_v18  ;;  %v51_v52 = vld [vmem:[%s1362_s2 + $0x47] ss:$0 sm:$0xff] }
 0x6be   :  { %v676_v58 = vmul.f32 %v675_v51, %v651_v53  ;;  %vm709_vm10 = vmor %vm707_vm9, %vm708_vm8 }
 0x6bf   :  { %v704_v60 = vsub.f32 1.0, %v703_v57 }
 0x6c0   :  { %v853_v61 = vclamps-f32 %v676_v58, 1.0 }
 0x6c1   :  { %v705_v0 = vmul.f32 %v946_v18, %v704_v60 }
 0x6c2   :  { %v719_v7 = vadd.f32 1.0, %v853_v61 }
 0x6c3   :  { %v706_v8 = vadd.f32 %v946_v18, %v705_v0 }
 0x6c4   :  { %v721_v5 = vmul.f32 %v719_v7, %v635_v4 }
 0x6c5   :  { %v710_v6 = vsel %vm709_vm10, %v946_v18, %v706_v8 }
 0x6c6   :  { %v715_v10 = vsel %vm712_vm1, %v714_v49, %v710_v6  ;;  %855 = vmatmul.msk.f32.vlgmr.msrb.gmra.mxu3 %vm206_vm2, %v721_v5 }
 0x6c7   :  { %v716_v12 = vmul.f32 %v715_v10, %v691_v9 }
 0x6c9   :  { %v854_v15 = vclamps-f32 %v716_v12, 1.0 }
 0x6cb   :  { %v720_v17 = vadd.f32 1.0, %v854_v15 }
 0x6cd   :  { %v722_v19 = vmul.f32 %v720_v17, %v636_v16 }
 0x6cf   :  { %856 = vmatmul.msk.f32.gmra.mxu3 %vm206_vm2, %v722_v19 }
 0x749   :  { %v746_v20 = vpop.f32.mrf.mxu3 }
 0x74a   :  { %v747_v21 = vadd.f32 %v746_v20, %v49_v48 }
 0x74c   :  { %v752_v59 = vadd.f32 %v747_v21, %v1278_v39 }
 0x74e   :  { %v754_v23 = vsel %vm64_vm0, %v752_v59, 0.0 }
 0x74f   :  { %755 = vadd.xlane.f32.xlu0 %v754_v23 }
 0x752   :  { %v749_v24 = vpop.f32.mrf.mxu3 }
 0x753   :  { %v750_v25 = vadd.f32 %v749_v24, %v49_v48 }
 0x755   :  { %v753_v42 = vadd.f32 %v750_v25, %v1282_v46 }
 0x757   :  { %v757_v55 = vsel %vm64_vm0, %v753_v42, 0.0 }
 0x758   :  { %758 = vadd.xlane.f32.xlu1 %v757_v55 }
 0x7c2   :  { %v756_v27 = vpop.xlane.xlu0 %755 }
 0x7c3   :  { %v760_v29 = vmul.f32 %v756_v27, %v1252_v2 }
 0x7c5   :  { %v762_v30 = vsub.f32 %v752_v59, %v760_v29 }
 0x7c7   :  { %v764_v3 = vmul.f32 %v762_v30, %v762_v30 }
 0x7c9   :  { %v766_v44 = vsel %vm64_vm0, %v764_v3, 0.0 }
 0x7ca   :  { %767 = vadd.xlane.f32.xlu2 %v766_v44 }
 0x7cb   :  { %v759_v31 = vpop.xlane.xlu1 %758 }
 0x7cc   :  { %v761_v39 = vmul.f32 %v759_v31, %v1252_v2 }
 0x7ce   :  { %v763_v32 = vsub.f32 %v753_v42, %v761_v39 }
 0x7d0   :  { %v765_v33 = vmul.f32 %v763_v32, %v763_v32 }
 0x7d2   :  { %v769_v34 = vsel %vm64_vm0, %v765_v33, 0.0 }
 0x7d3   :  { %770 = vadd.xlane.f32.xlu0 %v769_v34 }
 0x83d   :  { %v768_v46 = vpop.xlane.xlu2 %767 }
 0x83e   :  { %v772_v35 = vmul.f32 %v768_v46, %v1252_v2 }
 0x840   :  { %v774_v26 = vadd.f32 1e-05, %v772_v35 }
 0x842   :  { %947 = vrsqrt.f32 %v774_v26  ;;  %vm782_vm11 = vweird.f32 %v774_v26 }
 0x846   :  { %v771_v36 = vpop.xlane.xlu0 %770 }
 0x847   :  { %v773_v11 = vmul.f32 %v771_v36, %v1252_v2 }
 0x848   :  { %v948_v14 = vpop.eup %947 }
 0x849   :  { %v777_v28 = vmul.f32 %v948_v14, %v774_v26  ;;  %v775_v37 = vadd.f32 1e-05, %v773_v11  ;;  %vm783_vm2 = vweird.f32 %v948_v14 }
 0x84a   :  { %vm784_vm12 = vmor %vm782_vm11, %vm783_vm2 }
 0x84b   :  { %v778_v13 = vmul.f32 %v948_v14, %v777_v28  ;;  %949 = vrsqrt.f32 %v775_v37  ;;  %vm792_vm14 = vweird.f32 %v775_v37 }
 0x84d   :  { %v779_v38 = vmul.f32 0.5, %v778_v13 }
 0x84f   :  { %v780_v40 = vsub.f32 1.5, %v779_v38 }
 0x851   :  { %v950_v43 = vpop.eup %949  ;;  %v781_v45 = vmul.f32 %v948_v14, %v780_v40 }
 0x852   :  { %v787_v41 = vmul.f32 %v950_v43, %v775_v37  ;;  %vm793_vm13 = vweird.f32 %v950_v43 }
 0x853   :  { %v785_v47 = vsel %vm784_vm12, %v948_v14, %v781_v45  ;;  %vm794_vm15 = vmor %vm792_vm14, %vm793_vm13 }
 0x854   :  { %v796_v50 = vmul.f32 %v785_v47, %v762_v30  ;;  %v788_v2 = vmul.f32 %v950_v43, %v787_v41 }
 0x856   :  { %v798_v18 = vmul.f32 %v796_v50, %v50_v22  ;;  %v789_v53 = vmul.f32 0.5, %v788_v2 }
 0x858   :  { %v790_v54 = vsub.f32 1.5, %v789_v53  ;;  %v800_v51 = vadd.f32 %v798_v18, %v51_v52 }
 0x85a   :  { %v791_v56 = vmul.f32 %v950_v43, %v790_v54  ;;  %802 = vst.msk [vmem:[#allocation5] sm:$0xff] %vm64_vm0, %v800_v51 }
 0x85c   :  { %v795_v57 = vsel %vm794_vm15, %v950_v43, %v791_v56 }
 0x85d   :  { %v797_v58 = vmul.f32 %v795_v57, %v763_v32 }
 0x85f   :  { %v799_v60 = vmul.f32 %v797_v58, %v50_v22 }
 0x861   :  { %v801_v61 = vadd.f32 %v799_v60, %v51_v52 }
 0x863   :  { %803 = vst.msk [vmem:[#allocation5 + $0x8] sm:$0xff] %vm64_vm0, %v801_v61 }
 0x864   :  { %816 = dma.vmem_to_hbm [thread:$0]  %s809_s10, 256, %s811_s12, [#allocation4], %s1004_s20, %s1004_s20, %s1005_s21  }
 0x865   :  { %1001 = dma.done.wait [#allocation4], 256  }
 0x866   :  { %1002 = vsyncadd [#allocation4], 4294967040 }
 0x867   :  { %821 = vsyncpa [#allocation3], 1 }
 0x868   :  { %822 = vsyncpa [#allocation4], 1 }

</bundles_post_ra>
